<compile_context>
chip_gen: v6e
topology: v6e:2x2x1
jax: 0.10.0
libtpu: 0.0.40
codegen_flags: <defaults>
</compile_context>

<pallas_src>
import jax
import jax.numpy as jnp
from jax.experimental import pallas as pl
from jax.experimental.pallas import tpu as pltpu


def _round_up(v, m):
    return ((v + m - 1) // m) * m


# --------------------------------------------------------------------------- kernels
def _decom_kernel_folded(patches_ref, w_ref, out_ref):
    # (tile_p, K_pad) bf16 @ (K_pad, tile_n) bf16 -> (tile_p, tile_n), f32 accumulation.
    out_ref[...] = jnp.dot(
        patches_ref[...], w_ref[...], preferred_element_type=jnp.float32
    ).astype(out_ref.dtype)


def _decom_kernel_two_stage(patches_ref, w1_ref, w2_ref, out_ref):
    # stage 1: grouped conv_basis as a block-diagonal GEMM; stage 2: the 1x1 conv.
    mid = jnp.dot(patches_ref[...], w1_ref[...], preferred_element_type=jnp.float32)
    out_ref[...] = jnp.dot(
        mid.astype(w2_ref.dtype), w2_ref[...], preferred_element_type=jnp.float32
    ).astype(out_ref.dtype)


# --------------------------------------------------------------------------- wrapper helpers
def _im2col_nhwc(x_nchw, k, stride):
    """Patches directly in the final (P, k*k*C) layout; column order (kernel_pos, channel)."""
    N, C, H, W = x_nchw.shape
    p = k // 2
    x = jnp.transpose(x_nchw, (0, 2, 3, 1))                        # NHWC
    xp = jnp.pad(x, ((0, 0), (p, p), (p, p), (0, 0)))
    Ho = (H + 2 * p - k) // stride + 1
    Wo = (W + 2 * p - k) // stride + 1
    cols = []
    for di in range(k):
        for dj in range(k):
            cols.append(xp[:, di:di + stride * Ho:stride, dj:dj + stride * Wo:stride, :])
    pat = jnp.stack(cols, axis=3)                                   # (N, Ho, Wo, k*k, C)
    return pat.reshape(N * Ho * Wo, k * k * C), Ho, Wo


def _vmem_limit_bytes():
    # v4/v5e/v6e: 128 MiB physical VMEM -> generous scoped limit.
    # v7x / unknown: only 64 MiB physical -> stay conservative so the tiling ports safely.
    try:
        kind = jax.devices()[0].device_kind.lower()
    except Exception:
        kind = ""
    if ("v2" in kind) or ("v3" in kind):
        return 14 * 1024 * 1024
    if ("v4" in kind) or ("v5" in kind) or ("v6" in kind):
        return 64 * 1024 * 1024
    return 40 * 1024 * 1024


# --------------------------------------------------------------------------- forward
def decom_block_forward(
    x, filter_bank, w_1x1, *, basis_size, stride=1, tile_p=None,
    out_dtype=jnp.float32, nchw_output=True, two_stage=None,
):
    """x: (N, C, H, W); filter_bank: (n_basis, basis_size, k, k);
    w_1x1: (out_channels, group*n_basis, 1, 1).  Matches DecomBlock.forward (bias=False)."""
    N, C, H, W = x.shape
    n_basis, bs, k, _ = filter_bank.shape
    assert bs == basis_size and C % basis_size == 0
    group = C // basis_size
    out_channels = w_1x1.shape[0]
    M = group * n_basis

    # ---- im2col at bf16, directly in the kernel's patch layout ----
    patches, Ho, Wo = _im2col_nhwc(x.astype(jnp.bfloat16), k, stride)   # (P, k*k*C) bf16
    P, K = patches.shape

    # ---- alignment ----
    out_pad = _round_up(out_channels, 128)            # lane-dense output (unmasked vst)
    if out_pad >= 512:                                # split out channels (v7x VMEM, MXU width)
        out_pad = _round_up(out_channels, 256)
        tile_n = 256
    else:
        tile_n = out_pad
    n_out = out_pad // tile_n
    K128 = _round_up(K, 128)
    K_pad = K128 if K128 <= int(K * 1.25) else _round_up(K, 16)   # never pad tiny K to 128
    M_pad = _round_up(M, 128)

    # ---- folded vs two-stage: folded only while FLOPs stay within ~2x of factored ----
    if two_stage is None:
        two_stage = K_pad * out_pad > 2 * (K_pad * M_pad + M_pad * out_pad)

    # ---- weights (folded/built in f32, streamed as bf16) ----
    fb_t = jnp.transpose(filter_bank, (2, 3, 1, 0)).reshape(k * k, bs, n_basis)  # (p, c, j)
    if two_stage:
        eye_g = jnp.eye(group, dtype=fb_t.dtype)
        w1 = jnp.einsum("pcj,gh->pgchj", fb_t, eye_g).reshape(K, M)   # block-diag stage-1
        w1 = jnp.pad(w1, ((0, K_pad - K), (0, M_pad - M))).astype(jnp.bfloat16)
        w2 = jnp.transpose(w_1x1.reshape(out_channels, M), (1, 0))
        w2 = jnp.pad(w2, ((0, M_pad - M), (0, out_pad - out_channels))).astype(jnp.bfloat16)
        weights = (w1, w2)
    else:
        w2_r = jnp.transpose(w_1x1.reshape(out_channels, group, n_basis), (1, 2, 0))
        w_eff = jnp.einsum("pcj,gjo->pgco", fb_t, w2_r).reshape(K, out_channels)
        w_eff = jnp.pad(
            w_eff, ((0, K_pad - K), (0, out_pad - out_channels))).astype(jnp.bfloat16)
        weights = (w_eff,)

    # ---- VMEM budget -> tile_p (multiple of 16: bf16 packs 16 rows per sublane group) ----
    out_itemsize = jnp.dtype(out_dtype).itemsize
    vmem_limit = _vmem_limit_bytes()
    budget = int(vmem_limit * 0.6)
    if two_stage:
        w_resident = K_pad * M_pad * 2 + M_pad * tile_n * 2 * (1 if n_out == 1 else 2)
        per_row = 2 * K_pad * 2 + 2 * tile_n * out_itemsize + M_pad * 6   # + f32/bf16 mid
    else:
        w_resident = K_pad * tile_n * 2 * (1 if n_out == 1 else 2)
        per_row = 2 * K_pad * 2 + 2 * tile_n * out_itemsize
    tile_cap = max(16, min(2048, ((budget - w_resident) // max(per_row, 1)) // 16 * 16))
    if tile_p is None:
        tile_p = tile_cap
    else:
        tile_p = max(16, min(_round_up(tile_p, 16), tile_cap))
    half_p = _round_up(max(16, -(-P // 2)), 16)        # keep >= 2 P-steps for megacore
    tile_p = max(16, min(tile_p, half_p))
    P_pad = _round_up(P, tile_p)
    if P_pad != P or K_pad != K:
        patches = jnp.pad(patches, ((0, P_pad - P), (0, K_pad - K)))

    if two_stage:
        flops = 2 * P_pad * (K_pad * M_pad + M_pad * out_pad)
    else:
        flops = 2 * P_pad * K_pad * out_pad
    bytes_accessed = (
        n_out * P_pad * K_pad * 2
        + sum(int(w.size) * 2 for w in weights)
        + P_pad * out_pad * out_itemsize
    )

    def _w_spec(shape, index_map, invariant, single_buffer):
        if invariant and single_buffer:
            # grid-invariant weight block: double-buffering it only burns VMEM
            return pl.BlockSpec(shape, index_map, pipeline_mode=pl.Buffered(1))
        return pl.BlockSpec(shape, index_map)

    def _run(single_buffer):
        patch_spec = pl.BlockSpec((tile_p, K_pad), lambda i, j: (i, 0))
        if two_stage:
            kernel = _decom_kernel_two_stage
            in_specs = [
                patch_spec,
                _w_spec((K_pad, M_pad), lambda i, j: (0, 0), True, single_buffer),
                _w_spec((M_pad, tile_n), lambda i, j: (0, j), n_out == 1, single_buffer),
            ]
        else:
            kernel = _decom_kernel_folded
            in_specs = [
                patch_spec,
                _w_spec((K_pad, tile_n), lambda i, j: (0, j), n_out == 1, single_buffer),
            ]
        return pl.pallas_call(
            kernel,
            out_shape=jax.ShapeDtypeStruct((P_pad, out_pad), out_dtype),
            grid_spec=pltpu.PrefetchScalarGridSpec(
                num_scalar_prefetch=0,
                grid=(P_pad // tile_p, n_out),
                in_specs=in_specs,
                out_specs=pl.BlockSpec((tile_p, tile_n), lambda i, j: (i, j)),
            ),
            compiler_params=pltpu.CompilerParams(
                dimension_semantics=("parallel", "parallel"),
                vmem_limit_bytes=vmem_limit,
            ),
            cost_estimate=pl.CostEstimate(
                flops=int(flops), transcendentals=0, bytes_accessed=int(bytes_accessed)),
        )(patches, *weights)

    try:
        out = _run(single_buffer=True)
    except Exception:
        # pl.Buffered(1) not supported on this jax version -> fall back to default buffering.
        out = _run(single_buffer=False)

    out = out[:P, :out_channels].reshape(N, Ho, Wo, out_channels)
    if nchw_output:
        out = jnp.transpose(out, (0, 3, 1, 2))                      # module semantics: NCHW
    return out


# --------------------------------------------------------------------------- reference
def _reference_forward(x, filter_bank, w_1x1, *, basis_size, stride=1):
    # pure-JAX f32 reference matching the PyTorch DecomBlock semantics (bias=False)
    N, C, H, W = x.shape
    k = filter_bank.shape[-1]
    group = C // basis_size
    outs = []
    for g in range(group):
        xg = x[:, g * basis_size:(g + 1) * basis_size]
        yg = jax.lax.conv_general_dilated(
            xg, filter_bank, window_strides=(stride, stride),
            padding=[(k // 2, k // 2), (k // 2, k // 2)],
            dimension_numbers=("NCHW", "OIHW", "NCHW"))
        outs.append(yg)
    mid = jnp.concatenate(outs, axis=1)
    return jax.lax.conv_general_dilated(
        mid, w_1x1, window_strides=(1, 1), padding="VALID",
        dimension_numbers=("NCHW", "OIHW", "NCHW"))


if __name__ == "__main__":
    # small shapes consistent with DecomBlock
    N, in_channels, H, W = 2, 4, 16, 16
    basis_size, n_basis, kernel_size = 2, 4, 3
    out_channels, stride = 8, 1
    group = in_channels // basis_size

    key = jax.random.PRNGKey(0)
    k1, k2, k3 = jax.random.split(key, 3)
    x = jax.random.normal(k1, (N, in_channels, H, W), jnp.float32)
    filter_bank = 0.1 * jax.random.normal(
        k2, (n_basis, basis_size, kernel_size, kernel_size), jnp.float32)
    w_1x1 = 0.1 * jax.random.normal(
        k3, (out_channels, group * n_basis, 1, 1), jnp.float32)

    ref = _reference_forward(x, filter_bank, w_1x1,
                             basis_size=basis_size, stride=stride)

    # path 1: auto (folded W_eff at these shapes)
    out = jax.block_until_ready(
        decom_block_forward(x, filter_bank, w_1x1,
                            basis_size=basis_size, stride=stride))
    assert out.shape == ref.shape, (out.shape, ref.shape)
    err = float(jnp.max(jnp.abs(out - ref)))
    assert jnp.allclose(out, ref, atol=3e-2, rtol=3e-2), err

    # path 2: explicitly exercise the two-stage (block-diagonal + 1x1) kernel as well
    out2 = jax.block_until_ready(
        decom_block_forward(x, filter_bank, w_1x1,
                            basis_size=basis_size, stride=stride, two_stage=True))
    err2 = float(jnp.max(jnp.abs(out2 - ref)))
    assert jnp.allclose(out2, ref, atol=3e-2, rtol=3e-2), err2

    print("KERNEL_OK")
</pallas_src>

<mosaic_0001>
module attributes {stable_mosaic.version = 11 : i64} {
  func.func @_decom_kernel_folded(%arg0: i32, %arg1: i32, %arg2: memref<256x48xbf16, #tpu.memory_space<vmem>>, %arg3: memref<48x128xbf16, #tpu.memory_space<vmem>>, %arg4: memref<256x128xf32, #tpu.memory_space<vmem>>) attributes {dimension_semantics = [#tpu.dimension_semantics<parallel>, #tpu.dimension_semantics<parallel>], iteration_bounds = array<i64: 2, 1>, scalar_prefetch = 0 : i64, scratch_operands = 0 : i64, tpu.core_type = #tpu.core_type<tc>, window_params = [{transform_indices = @transform_0, window_bounds = array<i64: 256, 48>}, {pipeline_mode = #tpu.pipeline_mode<synchronous>, transform_indices = @transform_1, window_bounds = array<i64: 48, 128>}, {transform_indices = @transform_2, window_bounds = array<i64: 256, 128>}]} {
    %c0 = arith.constant 0 : index
    %c0_0 = arith.constant 0 : index
    %0 = vector.load %arg2[%c0, %c0_0] : memref<256x48xbf16, #tpu.memory_space<vmem>>, vector<256x48xbf16>
    %c0_1 = arith.constant 0 : index
    %c0_2 = arith.constant 0 : index
    %1 = vector.load %arg3[%c0_1, %c0_2] : memref<48x128xbf16, #tpu.memory_space<vmem>>, vector<48x128xbf16>
    %cst = arith.constant dense<0.000000e+00> : vector<256x128xf32>
    %2 = tpu.matmul %0, %1, %cst {dimension_numbers = #tpu.dot_dimension_numbers<[1], [0], [0], [1], [0, 0, 1, 1], [], []>} : vector<256x48xbf16>, vector<48x128xbf16>, vector<256x128xf32> -> vector<256x128xf32>
    %c0_3 = arith.constant 0 : index
    %c0_4 = arith.constant 0 : index
    %3 = vector.load %arg4[%c0_3, %c0_4] : memref<256x128xf32, #tpu.memory_space<vmem>>, vector<256x128xf32>
    tpu.vector_store %arg4[%c0_3, %c0_4], %2 {strides = array<i32>} : memref<256x128xf32, #tpu.memory_space<vmem>>, vector<256x128xf32>,
    return
  }
  func.func @transform_0(%arg0: i32, %arg1: i32) -> (i32, i32) {
    %c0_i32 = arith.constant 0 : i32
    %c0_i32_0 = arith.constant 0 : i32
    return %arg0, %c0_i32 : i32, i32
  }
  func.func @transform_1(%arg0: i32, %arg1: i32) -> (i32, i32) {
    %c0_i32 = arith.constant 0 : i32
    %c0_i32_0 = arith.constant 0 : i32
    return %c0_i32, %arg1 : i32, i32
  }
  func.func @transform_2(%arg0: i32, %arg1: i32) -> (i32, i32) {
    %c0_i32 = arith.constant 0 : i32
    return %arg0, %arg1 : i32, i32
  }
}

module attributes {stable_mosaic.version = 11 : i64} {
  func.func @_decom_kernel_folded(%arg0: i32, %arg1: i32, %arg2: memref<256x48xbf16, #tpu.memory_space<vmem>>, %arg3: memref<48x128xbf16, #tpu.memory_space<vmem>>, %arg4: memref<256x128xf32, #tpu.memory_space<vmem>>) attributes {dimension_semantics = [#tpu.dimension_semantics<parallel>, #tpu.dimension_semantics<parallel>], iteration_bounds = array<i64: 2, 1>, scalar_prefetch = 0 : i64, scratch_operands = 0 : i64, tpu.core_type = #tpu.core_type<tc>, window_params = [{transform_indices = @transform_0, window_bounds = array<i64: 256, 48>}, {transform_indices = @transform_1, window_bounds = array<i64: 48, 128>}, {transform_indices = @transform_2, window_bounds = array<i64: 256, 128>}]} {
    %c0 = arith.constant 0 : index
    %c0_0 = arith.constant 0 : index
    %0 = vector.load %arg2[%c0, %c0_0] : memref<256x48xbf16, #tpu.memory_space<vmem>>, vector<256x48xbf16>
    %c0_1 = arith.constant 0 : index
    %c0_2 = arith.constant 0 : index
    %1 = vector.load %arg3[%c0_1, %c0_2] : memref<48x128xbf16, #tpu.memory_space<vmem>>, vector<48x128xbf16>
    %cst = arith.constant dense<0.000000e+00> : vector<256x128xf32>
    %2 = tpu.matmul %0, %1, %cst {dimension_numbers = #tpu.dot_dimension_numbers<[1], [0], [0], [1], [0, 0, 1, 1], [], []>} : vector<256x48xbf16>, vector<48x128xbf16>, vector<256x128xf32> -> vector<256x128xf32>
    %c0_3 = arith.constant 0 : index
    %c0_4 = arith.constant 0 : index
    %3 = vector.load %arg4[%c0_3, %c0_4] : memref<256x128xf32, #tpu.memory_space<vmem>>, vector<256x128xf32>
    tpu.vector_store %arg4[%c0_3, %c0_4], %2 {strides = array<i32>} : memref<256x128xf32, #tpu.memory_space<vmem>>, vector<256x128xf32>,
    return
  }
  func.func @transform_0(%arg0: i32, %arg1: i32) -> (i32, i32) {
    %c0_i32 = arith.constant 0 : i32
    %c0_i32_0 = arith.constant 0 : i32
    return %arg0, %c0_i32 : i32, i32
  }
  func.func @transform_1(%arg0: i32, %arg1: i32) -> (i32, i32) {
    %c0_i32 = arith.constant 0 : i32
    %c0_i32_0 = arith.constant 0 : i32
    return %c0_i32, %arg1 : i32, i32
  }
  func.func @transform_2(%arg0: i32, %arg1: i32) -> (i32, i32) {
    %c0_i32 = arith.constant 0 : i32
    return %arg0, %arg1 : i32, i32
  }
}

</mosaic_0001>

<bundles_post_ra>
// kernel: tpu_custom_call.1
= control target key start
LH: loop header
LB: loop body
LE: loop exit
PB: predicated region body
PF: predicated region fallthrough
CT: control target
= control target key end

     0   :  { %7 = vsyncpa [#allocation3], 0  ;;  %s1137_s0 = inlined_call_operand.vmem [shape: bf16[512,48], index: 0, kind: input, shape index: {}]   ;;  %s1138_s1 = inlined_call_operand.vmem [shape: bf16[48,128], index: 1, kind: input, shape index: {}]   ;;  %s1139_s2 = inlined_call_operand.hbm [shape: f32[512,128], index: 2, kind: output, shape index: {}]  }
   0x1   :  { %9 = vsyncpa [#allocation3 + $0x1], 0  ;;  %s942_s9 = smov 0   ;;  %s944_s10 = smov 0  }
   0x2   :  { %s946_s11 = smov 0   ;;  %s948_s12 = smov 0  }
   0x3   :  { %s950_s13 = smov 0   ;;  %s952_s14 = smov 0  }
   0x4 LB: > { %s657_s15 = sadd.s32 4294967295, %s922_s14   ;;  %s658_s16 = sadd.s32 4294967294, %s922_s14   ;;  %s922_s14 = sphi %s952_s14, %s15_s14   ;;  %s918_s13 = sphi %s950_s13, %s1146_s13   ;;  %s914_s12 = sphi %s948_s12, %s1145_s12   ;;  %s910_s11 = sphi %s946_s11, %s1144_s11   ;;  %s906_s10 = sphi %s944_s10, %s1143_s10   ;;  %s902_s9 = sphi %s942_s9, %s1142_s9  }
   0x5   : > { %s27_s17 = sadd.s32 1, %s918_s13  ;;  %s88_s18 = sadd.s32 1, %s910_s11 }
   0x6   : > { %p29_p0 = scmp.ge.s32.totalorder %s27_s17, 2  ;;  %p98_p1 = scmp.ne.s32.totalorder %s910_s11, %s906_s10 }
   0x7   : > { %p99_p2 = scmp.eq.s32.totalorder %s657_s15, 1  ;;  %p104_p3 = scmp.ne.s32.totalorder %s906_s10, %s902_s9 }
   0x8   : > { %s1148_s17 = smov (%p29_p0, %s27_s17), 0  ;;  %p105_p5 = scmp.eq.s32.totalorder %s658_s16, 1 }
   0x9   : > { %p982_p4 = por %p99_p2, %p98_p1  ;;  %s83_s20 = ssub.s32 %s918_s13, %s1148_s17 }
   0xa   : > { %p662_p6 = scmp.ge.s32.totalorder %s922_s14, 1  ;;  %p86_p7 = scmp.eq.s32.totalorder %s83_s20, 0 }
   0xb   : > { %p989_p8 = por %p105_p5, %p104_p3  ;;  %p139_p9 = scmp.lt.s32.totalorder %s922_s14, 3 }
   0xc   : > { %s995_s22 = scalar_select %p86_p7, %s910_s11, %s88_s18  }
   0xd   : > { %p140_p10 = pnand %p662_p6, %p139_p9 }
   0xe   : > { %s664_s25 = sshll.u32 (!%p140_p10), %s914_s12, 5  ;;  %s162_s6 = sand.u32 (!%p140_p10), 1, %s906_s10  }
   0xf   : > { %143 = sbr.rel (%p140_p10) target bundleno = 270 (0x10e), region = 28  ;;  %p166_p11 = scmp.lt.s32.totalorder (!%p140_p10), %s664_s25, 63 }
  0x10   : > { %s663_s7 = sshll.u32 (!%p140_p10), %s162_s6, 8  ;;  %s706_s15 = sshll.u32 (!%p140_p10), %s914_s12, 12 }
  0x11   : > { %s1047_s8 = scalar_lea.vmem (!%p140_p10), [#allocation2], %s663_s7  ;;  %s1082_s23 = scalar_lea.hbm (!%p140_p10), %s1139_s2, %s706_s15 }
  0x12   : > { %s570_s16 = sshll.u32 (!%p140_p10), %s1047_s8, 4  ;;  %s1092_s12 = scalar_lea.sflag (!%p140_p10), [#allocation3], %s162_s6  ;;  %s1084_s16 = int_to_ptr.vmem [resolvable:$true] %s570_s16 }
  0x13   : > { %s846_s24 = scalar_lea.vmem (!%p140_p10), %s1084_s16, 4096 }
  0x14   : > { %v827_v0 = vld [vmem:[%s1138_s1 + $0x10] sm:$0xff]   ;;  %v828_v1 = vld [vmem:[%s1138_s1 + $0x8] sm:$0xff]   ;;  %s1150_s25 = smov (!%p166_p11, %s664_s25), 63  ;;  %v829_v2 = vld [vmem:[%s1138_s1] sm:$0xff]   ;;  %vm313_vm0 = vcmask 392192   ;;  %p847_p12 = scmp.ne.s32.totalorder %s1084_s16, %s846_s24 }
  0x15   : > { %726 = vmatprep.subr.bf16.mxu0 %v827_v0  ;;  %764 = vmatprep.subr.bf16.mxu1 %v827_v0  ;;  %s665_s30 = sshll.u32 %s1150_s25, 2  ;;  %s924_s25 = smov [#allocation2]  }
  0x16   : > { %727 = vmatpush3.bf16.msra.mxu0 %v827_v0  ;;  %767 = vmatpush3.bf16.msra.mxu1 %v827_v0  ;;  %s1010_s5 = scalar_lea.vmem %s1137_s0, %s665_s30  ;;  %p848_p13 = pnand %p847_p12, %p982_p4 }
  0x17   : > { %728 = vmatprep.subr.bf16.mxu0 %v828_v1  ;;  %765 = vmatprep.subr.bf16.mxu1 %v828_v1  ;;  %v830_v3 = vld [vmem:[%s1010_s5] sm:$0xff]   ;;  %v832_v5 = vld [vmem:[%s1010_s5 + $0x8] sm:$0xff]   ;;  %v834_v7 = vld [vmem:[%s1010_s5 + $0x10] sm:$0xff]   ;;  %s850_s26 = sshll.u32 %s924_s25, 4  ;;  %s851_s26 = int_to_ptr.vmem [resolvable:$false] %s850_s26 }
  0x18   : > { %v831_v4 = vld [vmem:[%s1010_s5 + $0x40] sm:$0xff]   ;;  %732 = vmatprep.mubr.msk.bf16.mxu0 %vm313_vm0, %v830_v3  ;;  %v833_v6 = vld [vmem:[%s1010_s5 + $0x48] sm:$0xff]   ;;  %v835_v8 = vld [vmem:[%s1010_s5 + $0x50] sm:$0xff]   ;;  %p849_p0 = pneg %p848_p13  ;;  %s852_s27 = scalar_lea.vmem %s851_s26, 8192 }
  0x19   : > { %748 = vmatprep.mubr.msk.bf16.mxu1 %vm313_vm0, %v831_v4  ;;  %v836_v9 = vld [vmem:[%s1010_s5 + $0x18] sm:$0xff]   ;;  %v838_v11 = vld [vmem:[%s1010_s5 + $0x20] sm:$0xff]   ;;  %v840_v13 = vld [vmem:[%s1010_s5 + $0x28] sm:$0xff]   ;;  %p853_p1 = scmp.lt.s32.totalorder %s1084_s16, %s851_s26  ;;  %p854_p2 = scmp.lt.s32.totalorder %s852_s27, %s846_s24 }
  0x1a   : > { %729 = vmatpush3.bf16.msra.mxu0 %v828_v1  ;;  %768 = vmatpush3.bf16.msra.mxu1 %v828_v1  ;;  %v837_v10 = vld [vmem:[%s1010_s5 + $0x58] sm:$0xff]   ;;  %v839_v12 = vld [vmem:[%s1010_s5 + $0x60] sm:$0xff]   ;;  %v841_v14 = vld [vmem:[%s1010_s5 + $0x68] sm:$0xff]  }
  0x1b   : > { %730 = vmatprep.subr.bf16.mxu0 %v829_v2  ;;  %766 = vmatprep.subr.bf16.mxu1 %v829_v2  ;;  %v842_v15 = vld [vmem:[%s1010_s5 + $0x30] sm:$0xff]   ;;  %v844_v17 = vld [vmem:[%s1010_s5 + $0x38] sm:$0xff]   ;;  %p855_p3 = por %p854_p2, %p853_p1 }
  0x1c   : > { %v843_v16 = vld [vmem:[%s1010_s5 + $0x70] sm:$0xff]   ;;  %v845_v18 = vld [vmem:[%s1010_s5 + $0x78] sm:$0xff]  }
  0x1d   : > { %p856_p5 = pnand %p855_p3, %p849_p0 }
  0x1e   : > { %731 = vmatpush3.bf16.msra.mxu0 %v829_v2  ;;  %769 = vmatpush3.bf16.msra.mxu1 %v829_v2 }
  0x21   : > { %733 = vmatmul.mubr.msk.bf16.vlgmr.msra.gmra.mxu0 %vm313_vm0, %v832_v5  ;;  %749 = vmatmul.mubr.msk.bf16.vlgmr.msra.gmra.mxu1 %vm313_vm0, %v833_v6 }
  0x22   : > { %736 = vmatprep.mubr.msk.bf16.mxu0 %vm313_vm0, %v834_v7  ;;  %752 = vmatprep.mubr.msk.bf16.mxu1 %vm313_vm0, %v835_v8 }
  0x29   : > { %737 = vmatmul.mubr.msk.bf16.gmra.mxu0 %vm313_vm0, %v836_v9  ;;  %753 = vmatmul.mubr.msk.bf16.gmra.mxu1 %vm313_vm0, %v837_v10 }
  0x2a   : > { %740 = vmatprep.mubr.msk.bf16.mxu0 %vm313_vm0, %v838_v11  ;;  %756 = vmatprep.mubr.msk.bf16.mxu1 %vm313_vm0, %v839_v12 }
  0x31   : > { %741 = vmatmul.mubr.msk.bf16.gmra.mxu0 %vm313_vm0, %v840_v13  ;;  %757 = vmatmul.mubr.msk.bf16.gmra.mxu1 %vm313_vm0, %v841_v14 }
  0x32   : > { %744 = vmatprep.mubr.msk.bf16.mxu0 %vm313_vm0, %v842_v15  ;;  %760 = vmatprep.mubr.msk.bf16.mxu1 %vm313_vm0, %v843_v16 }
  0x39   : > { %745 = vmatmul.mubr.msk.bf16.gmra.mxu0 %vm313_vm0, %v844_v17  ;;  %761 = vmatmul.mubr.msk.bf16.gmra.mxu1 %vm313_vm0, %v845_v18 }
  0xe1   : > { %v734_v19 = vpop.f32.mrf.mxu0  ;;  %v750_v20 = vpop.f32.mrf.mxu1 }
  0xe2   : > { %525 = vst [vmem:[%s1047_s8 + $0x10] sm:$0xff] %v734_v19  ;;  %541 = vst [vmem:[%s1047_s8 + $0x90] sm:$0xff] %v750_v20 }
  0xe3   : > { %v396_v21 = vpop.f32.mrf.mxu0  ;;  %v460_v22 = vpop.f32.mrf.mxu1 }
  0xe4   : > { %523 = vst [vmem:[%s1047_s8] sm:$0xff] %v396_v21  ;;  %539 = vst [vmem:[%s1047_s8 + $0x80] sm:$0xff] %v460_v22 }
  0xe5   : > { %v735_v23 = vpop.f32.mrf.mxu0  ;;  %v751_v24 = vpop.f32.mrf.mxu1 }
  0xe6   : > { %526 = vst [vmem:[%s1047_s8 + $0x18] sm:$0xff] %v735_v23  ;;  %542 = vst [vmem:[%s1047_s8 + $0x98] sm:$0xff] %v751_v24 }
  0xe7   : > { %v399_v25 = vpop.f32.mrf.mxu0  ;;  %v463_v26 = vpop.f32.mrf.mxu1 }
  0xe8   : > { %524 = vst [vmem:[%s1047_s8 + $0x8] sm:$0xff] %v399_v25  ;;  %540 = vst [vmem:[%s1047_s8 + $0x88] sm:$0xff] %v463_v26 }
  0xe9   : > { %v738_v27 = vpop.f32.mrf.mxu0  ;;  %v754_v28 = vpop.f32.mrf.mxu1 }
  0xea   : > { %529 = vst [vmem:[%s1047_s8 + $0x30] sm:$0xff] %v738_v27  ;;  %545 = vst [vmem:[%s1047_s8 + $0xb0] sm:$0xff] %v754_v28 }
  0xeb   : > { %v412_v29 = vpop.f32.mrf.mxu0  ;;  %v476_v30 = vpop.f32.mrf.mxu1 }
  0xec   : > { %527 = vst [vmem:[%s1047_s8 + $0x20] sm:$0xff] %v412_v29  ;;  %543 = vst [vmem:[%s1047_s8 + $0xa0] sm:$0xff] %v476_v30 }
  0xed   : > { %v739_v31 = vpop.f32.mrf.mxu0  ;;  %v755_v32 = vpop.f32.mrf.mxu1 }
  0xee   : > { %530 = vst [vmem:[%s1047_s8 + $0x38] sm:$0xff] %v739_v31  ;;  %546 = vst [vmem:[%s1047_s8 + $0xb8] sm:$0xff] %v755_v32 }
  0xef   : > { %v415_v33 = vpop.f32.mrf.mxu0  ;;  %v479_v34 = vpop.f32.mrf.mxu1 }
  0xf0   : > { %528 = vst [vmem:[%s1047_s8 + $0x28] sm:$0xff] %v415_v33  ;;  %544 = vst [vmem:[%s1047_s8 + $0xa8] sm:$0xff] %v479_v34 }
  0xf1   : > { %v742_v35 = vpop.f32.mrf.mxu0  ;;  %v758_v36 = vpop.f32.mrf.mxu1 }
  0xf2   : > { %533 = vst [vmem:[%s1047_s8 + $0x50] sm:$0xff] %v742_v35  ;;  %549 = vst [vmem:[%s1047_s8 + $0xd0] sm:$0xff] %v758_v36 }
  0xf3   : > { %v428_v37 = vpop.f32.mrf.mxu0  ;;  %v492_v38 = vpop.f32.mrf.mxu1 }
  0xf4   : > { %531 = vst [vmem:[%s1047_s8 + $0x40] sm:$0xff] %v428_v37  ;;  %547 = vst [vmem:[%s1047_s8 + $0xc0] sm:$0xff] %v492_v38 }
  0xf5   : > { %v743_v39 = vpop.f32.mrf.mxu0  ;;  %v759_v40 = vpop.f32.mrf.mxu1 }
  0xf6   : > { %534 = vst [vmem:[%s1047_s8 + $0x58] sm:$0xff] %v743_v39  ;;  %550 = vst [vmem:[%s1047_s8 + $0xd8] sm:$0xff] %v759_v40 }
  0xf7   : > { %v431_v41 = vpop.f32.mrf.mxu0  ;;  %v495_v42 = vpop.f32.mrf.mxu1 }
  0xf8   : > { %532 = vst [vmem:[%s1047_s8 + $0x48] sm:$0xff] %v431_v41  ;;  %548 = vst [vmem:[%s1047_s8 + $0xc8] sm:$0xff] %v495_v42 }
  0xf9   : > { %v746_v43 = vpop.f32.mrf.mxu0  ;;  %v762_v44 = vpop.f32.mrf.mxu1 }
  0xfa   : > { %537 = vst [vmem:[%s1047_s8 + $0x70] sm:$0xff] %v746_v43  ;;  %553 = vst [vmem:[%s1047_s8 + $0xf0] sm:$0xff] %v762_v44 }
  0xfb   : > { %v444_v45 = vpop.f32.mrf.mxu0  ;;  %v508_v46 = vpop.f32.mrf.mxu1 }
  0xfc   : > { %535 = vst [vmem:[%s1047_s8 + $0x60] sm:$0xff] %v444_v45  ;;  %551 = vst [vmem:[%s1047_s8 + $0xe0] sm:$0xff] %v508_v46 }
  0xfd   : > { %v747_v47 = vpop.f32.mrf.mxu0  ;;  %v763_v48 = vpop.f32.mrf.mxu1 }
  0xfe   : > { %538 = vst [vmem:[%s1047_s8 + $0x78] sm:$0xff] %v747_v47  ;;  %554 = vst [vmem:[%s1047_s8 + $0xf8] sm:$0xff] %v763_v48 }
  0xff   : > { %v447_v49 = vpop.f32.mrf.mxu0  ;;  %v511_v50 = vpop.f32.mrf.mxu1 }
 0x100   : > { %536 = vst [vmem:[%s1047_s8 + $0x68] sm:$0xff] %v447_v49  ;;  %552 = vst [vmem:[%s1047_s8 + $0xe8] sm:$0xff] %v511_v50 }
 0x101   : > { %859 = shalt.err (!%p856_p5)
}
 0x102   : > { %s860_s28 = scalar_lea.hbm %s1082_s23, 4096  ;;  %s864_s3 = scalar_lea.hbm %s1139_s2, 8192 }
 0x103   : > { %p861_p6 = scmp.ne.s32.totalorder %s1082_s23, %s860_s28  ;;  %p865_p10 = scmp.lt.s32.totalorder %s1082_s23, %s1139_s2 }
 0x104   : > { %p866_p11 = scmp.lt.s32.totalorder %s864_s3, %s860_s28 }
 0x105   : > { %p862_p7 = pnand %p861_p6, %p982_p4 }
 0x106   : > { %p867_p12 = por %p866_p11, %p865_p10 }
 0x107   : > { %p863_p9 = pneg %p862_p7 }
 0x109   : > { %p868_p13 = pnand %p867_p12, %p863_p9 }
 0x10b   : > { %871 = shalt.err (!%p868_p13)
}
 0x10c   : > { %s925_s6 = smov 128   ;;  %s926_s7 = smov 8  }
 0x10d   : > { %770 = dma.vmem_to_hbm [thread:$0]  (%p982_p4), %s1084_s16, 4096, %s1082_s23, %s1092_s12, %s925_s6, %s925_s6, %s926_s7  }
 0x10e PF: > { %p776_p0 = scmp.ge.s32.totalorder %s922_s14, 2  ;;  %s585_s8 = sand.u32 1, %s902_s9  }
 0x10f   : > { %s586_s15 = scalar_lea.sflag [#allocation3], %s585_s8 }
 0x110   : > { %p773_p1 = pnand %p776_p0, %p989_p8 }
 0x112   : > { %p774_p2 = pneg %p773_p1 }
 0x114   : > { %897 = dma.done.wait (%p774_p2), %s586_s15, 4096  }
 0x115   : > { %899 = vsyncadd (%p774_p2), %s586_s15, 4294963200  ;;  %s15_s14 = sadd.s32 1, %s922_s14   ;;  %s1142_s9 = smov %s906_s10 }
 0x116   : > { %p12_p3 = scmp.ge.s32.totalorder %s15_s14, 4   ;;  %s1143_s10 = smov %s910_s11 }
 0x117   : > { %s1144_s11 = smov %s995_s22  ;;  %s1145_s12 = smov %s918_s13 }
 0x118   : > { %s1146_s13 = smov %s1148_s17  ;;  %14 = sbr.rel (!%p12_p3) target bundleno = 4 (0x4), region = 66 }
 0x11d   :  { %591 = vsyncpa [#allocation3], 1 }
 0x11e   :  { %593 = vsyncpa [#allocation3 + $0x1], 1 }

// kernel: tpu_custom_call.1
= control target key start
LH: loop header
LB: loop body
LE: loop exit
PB: predicated region body
PF: predicated region fallthrough
CT: control target
= control target key end

     0   :  { %7 = vsyncpa [#allocation3], 0  ;;  %s1137_s0 = inlined_call_operand.vmem [shape: bf16[512,48], index: 0, kind: input, shape index: {}]   ;;  %s1138_s1 = inlined_call_operand.vmem [shape: bf16[48,128], index: 1, kind: input, shape index: {}]   ;;  %s1139_s2 = inlined_call_operand.hbm [shape: f32[512,128], index: 2, kind: output, shape index: {}]  }
   0x1   :  { %9 = vsyncpa [#allocation3 + $0x1], 0  ;;  %s942_s9 = smov 0   ;;  %s944_s10 = smov 0  }
   0x2   :  { %s946_s11 = smov 0   ;;  %s948_s12 = smov 0  }
   0x3   :  { %s950_s13 = smov 0   ;;  %s952_s14 = smov 0  }
   0x4 LB: > { %s657_s15 = sadd.s32 4294967295, %s922_s14   ;;  %s658_s16 = sadd.s32 4294967294, %s922_s14   ;;  %s922_s14 = sphi %s952_s14, %s15_s14   ;;  %s918_s13 = sphi %s950_s13, %s1146_s13   ;;  %s914_s12 = sphi %s948_s12, %s1145_s12   ;;  %s910_s11 = sphi %s946_s11, %s1144_s11   ;;  %s906_s10 = sphi %s944_s10, %s1143_s10   ;;  %s902_s9 = sphi %s942_s9, %s1142_s9  }
   0x5   : > { %s27_s17 = sadd.s32 1, %s918_s13  ;;  %s88_s18 = sadd.s32 1, %s910_s11 }
   0x6   : > { %p29_p0 = scmp.ge.s32.totalorder %s27_s17, 2  ;;  %p98_p1 = scmp.ne.s32.totalorder %s910_s11, %s906_s10 }
   0x7   : > { %p99_p2 = scmp.eq.s32.totalorder %s657_s15, 1  ;;  %p104_p3 = scmp.ne.s32.totalorder %s906_s10, %s902_s9 }
   0x8   : > { %s1148_s17 = smov (%p29_p0, %s27_s17), 0  ;;  %p105_p5 = scmp.eq.s32.totalorder %s658_s16, 1 }
   0x9   : > { %p982_p4 = por %p99_p2, %p98_p1  ;;  %s83_s20 = ssub.s32 %s918_s13, %s1148_s17 }
   0xa   : > { %p662_p6 = scmp.ge.s32.totalorder %s922_s14, 1  ;;  %p86_p7 = scmp.eq.s32.totalorder %s83_s20, 0 }
   0xb   : > { %p989_p8 = por %p105_p5, %p104_p3  ;;  %p139_p9 = scmp.lt.s32.totalorder %s922_s14, 3 }
   0xc   : > { %s995_s22 = scalar_select %p86_p7, %s910_s11, %s88_s18  }
   0xd   : > { %p140_p10 = pnand %p662_p6, %p139_p9 }
   0xe   : > { %s664_s25 = sshll.u32 (!%p140_p10), %s914_s12, 5  ;;  %s162_s6 = sand.u32 (!%p140_p10), 1, %s906_s10  }
   0xf   : > { %143 = sbr.rel (%p140_p10) target bundleno = 270 (0x10e), region = 28  ;;  %p166_p11 = scmp.lt.s32.totalorder (!%p140_p10), %s664_s25, 63 }
  0x10   : > { %s663_s7 = sshll.u32 (!%p140_p10), %s162_s6, 8  ;;  %s706_s15 = sshll.u32 (!%p140_p10), %s914_s12, 12 }
  0x11   : > { %s1047_s8 = scalar_lea.vmem (!%p140_p10), [#allocation2], %s663_s7  ;;  %s1082_s23 = scalar_lea.hbm (!%p140_p10), %s1139_s2, %s706_s15 }
  0x12   : > { %s570_s16 = sshll.u32 (!%p140_p10), %s1047_s8, 4  ;;  %s1092_s12 = scalar_lea.sflag (!%p140_p10), [#allocation3], %s162_s6  ;;  %s1084_s16 = int_to_ptr.vmem [resolvable:$true] %s570_s16 }
  0x13   : > { %s846_s24 = scalar_lea.vmem (!%p140_p10), %s1084_s16, 4096 }
  0x14   : > { %v827_v0 = vld [vmem:[%s1138_s1 + $0x10] sm:$0xff]   ;;  %v828_v1 = vld [vmem:[%s1138_s1 + $0x8] sm:$0xff]   ;;  %s1150_s25 = smov (!%p166_p11, %s664_s25), 63  ;;  %v829_v2 = vld [vmem:[%s1138_s1] sm:$0xff]   ;;  %vm313_vm0 = vcmask 392192   ;;  %p847_p12 = scmp.ne.s32.totalorder %s1084_s16, %s846_s24 }
  0x15   : > { %726 = vmatprep.subr.bf16.mxu0 %v827_v0  ;;  %764 = vmatprep.subr.bf16.mxu1 %v827_v0  ;;  %s665_s30 = sshll.u32 %s1150_s25, 2  ;;  %s924_s25 = smov [#allocation2]  }
  0x16   : > { %727 = vmatpush3.bf16.msra.mxu0 %v827_v0  ;;  %767 = vmatpush3.bf16.msra.mxu1 %v827_v0  ;;  %s1010_s5 = scalar_lea.vmem %s1137_s0, %s665_s30  ;;  %p848_p13 = pnand %p847_p12, %p982_p4 }
  0x17   : > { %728 = vmatprep.subr.bf16.mxu0 %v828_v1  ;;  %765 = vmatprep.subr.bf16.mxu1 %v828_v1  ;;  %v830_v3 = vld [vmem:[%s1010_s5] sm:$0xff]   ;;  %v832_v5 = vld [vmem:[%s1010_s5 + $0x8] sm:$0xff]   ;;  %v834_v7 = vld [vmem:[%s1010_s5 + $0x10] sm:$0xff]   ;;  %s850_s26 = sshll.u32 %s924_s25, 4  ;;  %s851_s26 = int_to_ptr.vmem [resolvable:$false] %s850_s26 }
  0x18   : > { %v831_v4 = vld [vmem:[%s1010_s5 + $0x40] sm:$0xff]   ;;  %732 = vmatprep.mubr.msk.bf16.mxu0 %vm313_vm0, %v830_v3  ;;  %v833_v6 = vld [vmem:[%s1010_s5 + $0x48] sm:$0xff]   ;;  %v835_v8 = vld [vmem:[%s1010_s5 + $0x50] sm:$0xff]   ;;  %p849_p0 = pneg %p848_p13  ;;  %s852_s27 = scalar_lea.vmem %s851_s26, 8192 }
  0x19   : > { %748 = vmatprep.mubr.msk.bf16.mxu1 %vm313_vm0, %v831_v4  ;;  %v836_v9 = vld [vmem:[%s1010_s5 + $0x18] sm:$0xff]   ;;  %v838_v11 = vld [vmem:[%s1010_s5 + $0x20] sm:$0xff]   ;;  %v840_v13 = vld [vmem:[%s1010_s5 + $0x28] sm:$0xff]   ;;  %p853_p1 = scmp.lt.s32.totalorder %s1084_s16, %s851_s26  ;;  %p854_p2 = scmp.lt.s32.totalorder %s852_s27, %s846_s24 }
  0x1a   : > { %729 = vmatpush3.bf16.msra.mxu0 %v828_v1  ;;  %768 = vmatpush3.bf16.msra.mxu1 %v828_v1  ;;  %v837_v10 = vld [vmem:[%s1010_s5 + $0x58] sm:$0xff]   ;;  %v839_v12 = vld [vmem:[%s1010_s5 + $0x60] sm:$0xff]   ;;  %v841_v14 = vld [vmem:[%s1010_s5 + $0x68] sm:$0xff]  }
  0x1b   : > { %730 = vmatprep.subr.bf16.mxu0 %v829_v2  ;;  %766 = vmatprep.subr.bf16.mxu1 %v829_v2  ;;  %v842_v15 = vld [vmem:[%s1010_s5 + $0x30] sm:$0xff]   ;;  %v844_v17 = vld [vmem:[%s1010_s5 + $0x38] sm:$0xff]   ;;  %p855_p3 = por %p854_p2, %p853_p1 }
  0x1c   : > { %v843_v16 = vld [vmem:[%s1010_s5 + $0x70] sm:$0xff]   ;;  %v845_v18 = vld [vmem:[%s1010_s5 + $0x78] sm:$0xff]  }
  0x1d   : > { %p856_p5 = pnand %p855_p3, %p849_p0 }
  0x1e   : > { %731 = vmatpush3.bf16.msra.mxu0 %v829_v2  ;;  %769 = vmatpush3.bf16.msra.mxu1 %v829_v2 }
  0x21   : > { %733 = vmatmul.mubr.msk.bf16.vlgmr.msra.gmra.mxu0 %vm313_vm0, %v832_v5  ;;  %749 = vmatmul.mubr.msk.bf16.vlgmr.msra.gmra.mxu1 %vm313_vm0, %v833_v6 }
  0x22   : > { %736 = vmatprep.mubr.msk.bf16.mxu0 %vm313_vm0, %v834_v7  ;;  %752 = vmatprep.mubr.msk.bf16.mxu1 %vm313_vm0, %v835_v8 }
  0x29   : > { %737 = vmatmul.mubr.msk.bf16.gmra.mxu0 %vm313_vm0, %v836_v9  ;;  %753 = vmatmul.mubr.msk.bf16.gmra.mxu1 %vm313_vm0, %v837_v10 }
  0x2a   : > { %740 = vmatprep.mubr.msk.bf16.mxu0 %vm313_vm0, %v838_v11  ;;  %756 = vmatprep.mubr.msk.bf16.mxu1 %vm313_vm0, %v839_v12 }
  0x31   : > { %741 = vmatmul.mubr.msk.bf16.gmra.mxu0 %vm313_vm0, %v840_v13  ;;  %757 = vmatmul.mubr.msk.bf16.gmra.mxu1 %vm313_vm0, %v841_v14 }
  0x32   : > { %744 = vmatprep.mubr.msk.bf16.mxu0 %vm313_vm0, %v842_v15  ;;  %760 = vmatprep.mubr.msk.bf16.mxu1 %vm313_vm0, %v843_v16 }
  0x39   : > { %745 = vmatmul.mubr.msk.bf16.gmra.mxu0 %vm313_vm0, %v844_v17  ;;  %761 = vmatmul.mubr.msk.bf16.gmra.mxu1 %vm313_vm0, %v845_v18 }
  0xe1   : > { %v734_v19 = vpop.f32.mrf.mxu0  ;;  %v750_v20 = vpop.f32.mrf.mxu1 }
  0xe2   : > { %525 = vst [vmem:[%s1047_s8 + $0x10] sm:$0xff] %v734_v19  ;;  %541 = vst [vmem:[%s1047_s8 + $0x90] sm:$0xff] %v750_v20 }
  0xe3   : > { %v396_v21 = vpop.f32.mrf.mxu0  ;;  %v460_v22 = vpop.f32.mrf.mxu1 }
  0xe4   : > { %523 = vst [vmem:[%s1047_s8] sm:$0xff] %v396_v21  ;;  %539 = vst [vmem:[%s1047_s8 + $0x80] sm:$0xff] %v460_v22 }
  0xe5   : > { %v735_v23 = vpop.f32.mrf.mxu0  ;;  %v751_v24 = vpop.f32.mrf.mxu1 }
  0xe6   : > { %526 = vst [vmem:[%s1047_s8 + $0x18] sm:$0xff] %v735_v23  ;;  %542 = vst [vmem:[%s1047_s8 + $0x98] sm:$0xff] %v751_v24 }
  0xe7   : > { %v399_v25 = vpop.f32.mrf.mxu0  ;;  %v463_v26 = vpop.f32.mrf.mxu1 }
  0xe8   : > { %524 = vst [vmem:[%s1047_s8 + $0x8] sm:$0xff] %v399_v25  ;;  %540 = vst [vmem:[%s1047_s8 + $0x88] sm:$0xff] %v463_v26 }
  0xe9   : > { %v738_v27 = vpop.f32.mrf.mxu0  ;;  %v754_v28 = vpop.f32.mrf.mxu1 }
  0xea   : > { %529 = vst [vmem:[%s1047_s8 + $0x30] sm:$0xff] %v738_v27  ;;  %545 = vst [vmem:[%s1047_s8 + $0xb0] sm:$0xff] %v754_v28 }
  0xeb   : > { %v412_v29 = vpop.f32.mrf.mxu0  ;;  %v476_v30 = vpop.f32.mrf.mxu1 }
  0xec   : > { %527 = vst [vmem:[%s1047_s8 + $0x20] sm:$0xff] %v412_v29  ;;  %543 = vst [vmem:[%s1047_s8 + $0xa0] sm:$0xff] %v476_v30 }
  0xed   : > { %v739_v31 = vpop.f32.mrf.mxu0  ;;  %v755_v32 = vpop.f32.mrf.mxu1 }
  0xee   : > { %530 = vst [vmem:[%s1047_s8 + $0x38] sm:$0xff] %v739_v31  ;;  %546 = vst [vmem:[%s1047_s8 + $0xb8] sm:$0xff] %v755_v32 }
  0xef   : > { %v415_v33 = vpop.f32.mrf.mxu0  ;;  %v479_v34 = vpop.f32.mrf.mxu1 }
  0xf0   : > { %528 = vst [vmem:[%s1047_s8 + $0x28] sm:$0xff] %v415_v33  ;;  %544 = vst [vmem:[%s1047_s8 + $0xa8] sm:$0xff] %v479_v34 }
  0xf1   : > { %v742_v35 = vpop.f32.mrf.mxu0  ;;  %v758_v36 = vpop.f32.mrf.mxu1 }
  0xf2   : > { %533 = vst [vmem:[%s1047_s8 + $0x50] sm:$0xff] %v742_v35  ;;  %549 = vst [vmem:[%s1047_s8 + $0xd0] sm:$0xff] %v758_v36 }
  0xf3   : > { %v428_v37 = vpop.f32.mrf.mxu0  ;;  %v492_v38 = vpop.f32.mrf.mxu1 }
  0xf4   : > { %531 = vst [vmem:[%s1047_s8 + $0x40] sm:$0xff] %v428_v37  ;;  %547 = vst [vmem:[%s1047_s8 + $0xc0] sm:$0xff] %v492_v38 }
  0xf5   : > { %v743_v39 = vpop.f32.mrf.mxu0  ;;  %v759_v40 = vpop.f32.mrf.mxu1 }
  0xf6   : > { %534 = vst [vmem:[%s1047_s8 + $0x58] sm:$0xff] %v743_v39  ;;  %550 = vst [vmem:[%s1047_s8 + $0xd8] sm:$0xff] %v759_v40 }
  0xf7   : > { %v431_v41 = vpop.f32.mrf.mxu0  ;;  %v495_v42 = vpop.f32.mrf.mxu1 }
  0xf8   : > { %532 = vst [vmem:[%s1047_s8 + $0x48] sm:$0xff] %v431_v41  ;;  %548 = vst [vmem:[%s1047_s8 + $0xc8] sm:$0xff] %v495_v42 }
  0xf9   : > { %v746_v43 = vpop.f32.mrf.mxu0  ;;  %v762_v44 = vpop.f32.mrf.mxu1 }
  0xfa   : > { %537 = vst [vmem:[%s1047_s8 + $0x70] sm:$0xff] %v746_v43  ;;  %553 = vst [vmem:[%s1047_s8 + $0xf0] sm:$0xff] %v762_v44 }
  0xfb   : > { %v444_v45 = vpop.f32.mrf.mxu0  ;;  %v508_v46 = vpop.f32.mrf.mxu1 }
  0xfc   : > { %535 = vst [vmem:[%s1047_s8 + $0x60] sm:$0xff] %v444_v45  ;;  %551 = vst [vmem:[%s1047_s8 + $0xe0] sm:$0xff] %v508_v46 }
  0xfd   : > { %v747_v47 = vpop.f32.mrf.mxu0  ;;  %v763_v48 = vpop.f32.mrf.mxu1 }
  0xfe   : > { %538 = vst [vmem:[%s1047_s8 + $0x78] sm:$0xff] %v747_v47  ;;  %554 = vst [vmem:[%s1047_s8 + $0xf8] sm:$0xff] %v763_v48 }
  0xff   : > { %v447_v49 = vpop.f32.mrf.mxu0  ;;  %v511_v50 = vpop.f32.mrf.mxu1 }
 0x100   : > { %536 = vst [vmem:[%s1047_s8 + $0x68] sm:$0xff] %v447_v49  ;;  %552 = vst [vmem:[%s1047_s8 + $0xe8] sm:$0xff] %v511_v50 }
 0x101   : > { %859 = shalt.err (!%p856_p5)
}
 0x102   : > { %s860_s28 = scalar_lea.hbm %s1082_s23, 4096  ;;  %s864_s3 = scalar_lea.hbm %s1139_s2, 8192 }
 0x103   : > { %p861_p6 = scmp.ne.s32.totalorder %s1082_s23, %s860_s28  ;;  %p865_p10 = scmp.lt.s32.totalorder %s1082_s23, %s1139_s2 }
 0x104   : > { %p866_p11 = scmp.lt.s32.totalorder %s864_s3, %s860_s28 }
 0x105   : > { %p862_p7 = pnand %p861_p6, %p982_p4 }
 0x106   : > { %p867_p12 = por %p866_p11, %p865_p10 }
 0x107   : > { %p863_p9 = pneg %p862_p7 }
 0x109   : > { %p868_p13 = pnand %p867_p12, %p863_p9 }
 0x10b   : > { %871 = shalt.err (!%p868_p13)
}
 0x10c   : > { %s925_s6 = smov 128   ;;  %s926_s7 = smov 8  }
 0x10d   : > { %770 = dma.vmem_to_hbm [thread:$0]  (%p982_p4), %s1084_s16, 4096, %s1082_s23, %s1092_s12, %s925_s6, %s925_s6, %s926_s7  }
 0x10e PF: > { %p776_p0 = scmp.ge.s32.totalorder %s922_s14, 2  ;;  %s585_s8 = sand.u32 1, %s902_s9  }
 0x10f   : > { %s586_s15 = scalar_lea.sflag [#allocation3], %s585_s8 }
 0x110   : > { %p773_p1 = pnand %p776_p0, %p989_p8 }
 0x112   : > { %p774_p2 = pneg %p773_p1 }
 0x114   : > { %897 = dma.done.wait (%p774_p2), %s586_s15, 4096  }
 0x115   : > { %899 = vsyncadd (%p774_p2), %s586_s15, 4294963200  ;;  %s15_s14 = sadd.s32 1, %s922_s14   ;;  %s1142_s9 = smov %s906_s10 }
 0x116   : > { %p12_p3 = scmp.ge.s32.totalorder %s15_s14, 4   ;;  %s1143_s10 = smov %s910_s11 }
 0x117   : > { %s1144_s11 = smov %s995_s22  ;;  %s1145_s12 = smov %s918_s13 }
 0x118   : > { %s1146_s13 = smov %s1148_s17  ;;  %14 = sbr.rel (!%p12_p3) target bundleno = 4 (0x4), region = 66 }
 0x11d   :  { %591 = vsyncpa [#allocation3], 1 }
 0x11e   :  { %593 = vsyncpa [#allocation3 + $0x1], 1 }

</bundles_post_ra>
